<compile_context>
chip_gen: v5e
topology: v5e:2x2
jax: 0.10.0
libtpu: 0.0.40
codegen_flags: <defaults>
</compile_context>

<pallas_src>
import functools

import jax
import jax.numpy as jnp
from jax.experimental import pallas as pl
from jax.experimental.pallas import tpu as pltpu

LANES = 128
_MAX_LOSS_ROWS = 8  # sublane-aligned number of partial-sum rows per grid step


def _round_up(x, m):
    return -(-x // m) * m


def _elementwise_loss_term(diff, loss_type):
    """Per-element contribution of each supported sub-loss (mean taken later)."""
    if loss_type == "mse":
        return diff * diff
    if loss_type == "l1":
        return jnp.abs(diff)
    if loss_type == "smooth_l1":
        ad = jnp.abs(diff)
        return jnp.where(ad < 1.0, 0.5 * diff * diff, ad - 0.5)
    raise ValueError(f"unsupported loss type: {loss_type}")


def _multiple_loss_kernel(p_ref, t_ref, out_ref, *, loss_types, last_rows):
    """One (TR, 128) slab per grid step -> per-lane partial sums (1, 8, 128)."""
    p = p_ref[...].astype(jnp.float32)   # cast in-kernel; DMA stays narrow
    t = t_ref[...].astype(jnp.float32)
    diff = p - t  # VPU elementwise, computed once and shared by all sub-losses

    tr = p.shape[0]
    if last_rows != tr:
        # Ragged tail: the final grid step's block extends past the array's
        # last row (OOB reads are undefined), so zero those rows' diff.
        # Masking diff (not each term) is enough because every supported
        # sub-loss satisfies f(0) == 0.  This branch is compiled only when the
        # shapes are actually ragged (static check).
        row = jax.lax.broadcasted_iota(jnp.int32, diff.shape, 0)
        is_last = pl.program_id(0) == pl.num_programs(0) - 1
        limit = jnp.where(is_last, last_rows, tr)
        diff = jnp.where(row < limit, diff, 0.0)

    rows_out = []
    for lt in loss_types:
        term = _elementwise_loss_term(diff, lt)
        # Reduce only over the sublane axis -> per-lane (1, 128) partial sums.
        rows_out.append(jnp.sum(term, axis=0, keepdims=True))
    n = len(rows_out)
    if n < _MAX_LOSS_ROWS:
        rows_out.append(jnp.zeros((_MAX_LOSS_ROWS - n, LANES), jnp.float32))
    # Single unmasked lane-dense store of the whole (1, 8, 128) block.
    out_ref[...] = jnp.concatenate(rows_out, axis=0)[None]


def multiple_loss(predict, target, loss_types=("mse", "l1"), weights=None,
                  block_rows=2048):
    """Pallas implementation of MultipleLoss.forward (returns a scalar f32)."""
    loss_types = tuple(loss_types)
    n_losses = len(loss_types)
    assert 1 <= n_losses <= _MAX_LOSS_ROWS
    if weights is None:
        weights = [1.0 / n_losses] * n_losses
    assert len(weights) == n_losses
    assert predict.shape == target.shape

    n_elems = 1
    for d in predict.shape:
        n_elems *= int(d)

    flat_p = predict.reshape(-1)
    flat_t = target.reshape(-1)

    # Lane-dense main body: (rows, 128) in the input's NATIVE dtype.  When
    # n_elems is a multiple of 128 (the common case) this reshape is a pure
    # bitcast — no pad, no astype, no extra HBM round trip.
    rows = n_elems // LANES
    main = rows * LANES

    sums = jnp.zeros((_MAX_LOSS_ROWS,), jnp.float32)

    if rows > 0:
        p2 = flat_p[:main].reshape(rows, LANES)
        t2 = flat_t[:main].reshape(rows, LANES)

        # Block rows: multiple of 32 (covers f32/bf16/fp8 sublane packing);
        # aim for a grid of >= 2 steps so v7x megacore can split the work,
        # capped at block_rows (f32: 2*2*tr*128*4 B of double-buffered VMEM,
        # ~4 MiB at tr=2048 — under every generation's scoped default).
        tr = min(block_rows, max(32, _round_up(-(-rows // 2), 32)))
        grid = -(-rows // tr)
        last_rows = rows - (grid - 1) * tr  # valid rows in the final block

        kernel = functools.partial(
            _multiple_loss_kernel, loss_types=loss_types, last_rows=last_rows)

        in_bytes = (jnp.dtype(predict.dtype).itemsize
                    + jnp.dtype(target.dtype).itemsize)
        cost = pl.CostEstimate(
            flops=3 * n_losses * main,
            transcendentals=0,
            bytes_accessed=main * in_bytes + grid * _MAX_LOSS_ROWS * LANES * 4)

        partials = pl.pallas_call(
            kernel,
            out_shape=jax.ShapeDtypeStruct((grid, _MAX_LOSS_ROWS, LANES),
                                           jnp.float32),
            grid=(grid,),
            in_specs=[
                pl.BlockSpec((tr, LANES), lambda i: (i, 0)),
                pl.BlockSpec((tr, LANES), lambda i: (i, 0)),
            ],
            out_specs=pl.BlockSpec((1, _MAX_LOSS_ROWS, LANES),
                                   lambda i: (i, 0, 0)),
            compiler_params=pltpu.CompilerParams(
                dimension_semantics=("parallel",)),  # independent per-step partials
            cost_estimate=cost,
        )(p2, t2)

        # Tiny final combine in plain JAX: 8 * grid * 128 adds.
        sums = sums + jnp.sum(partials, axis=(0, 2))  # (8,)

    # Sub-128 ragged remainder (< LANES elements): plain JAX, negligible cost.
    if main < n_elems:
        dtail = (flat_p[main:].astype(jnp.float32)
                 - flat_t[main:].astype(jnp.float32))
        tail = [jnp.sum(_elementwise_loss_term(dtail, lt)) for lt in loss_types]
        tail += [jnp.float32(0.0)] * (_MAX_LOSS_ROWS - n_losses)
        sums = sums + jnp.stack(tail)

    inv_n = jnp.float32(1.0 / n_elems)
    total_loss = jnp.float32(0.0)
    for k, w in enumerate(weights):
        total_loss = total_loss + jnp.float32(w) * sums[k] * inv_n
    return total_loss


def multiple_loss_ref(predict, target, loss_types=("mse", "l1"), weights=None):
    """Pure-JAX reference matching MultipleLoss(losses=[MSE, L1, ...])."""
    n_losses = len(loss_types)
    if weights is None:
        weights = [1.0 / n_losses] * n_losses
    p = predict.astype(jnp.float32)
    t = target.astype(jnp.float32)
    diff = p - t
    total = jnp.float32(0.0)
    for lt, w in zip(loss_types, weights):
        if lt == "mse":
            l = jnp.mean(diff * diff)
        elif lt == "l1":
            l = jnp.mean(jnp.abs(diff))
        elif lt == "smooth_l1":
            ad = jnp.abs(diff)
            l = jnp.mean(jnp.where(ad < 1.0, 0.5 * diff * diff, ad - 0.5))
        else:
            raise ValueError(lt)
        total = total + jnp.float32(w) * l
    return total


if __name__ == "__main__":
    key = jax.random.PRNGKey(0)
    k1, k2, k3, k4 = jax.random.split(key, 4)

    # (B, C, H, W), NCHW as in the PyTorch usage.
    shape = (2, 4, 16, 16)
    predict = jax.random.normal(k1, shape, dtype=jnp.float32)
    target = jax.random.normal(k2, shape, dtype=jnp.float32)

    loss = multiple_loss(predict, target)          # default: 0.5*MSE + 0.5*L1
    jax.block_until_ready(loss)
    ref = multiple_loss_ref(predict, target)
    assert jnp.allclose(loss, ref, rtol=1e-5, atol=1e-5), (loss, ref)

    # Native-bf16 inputs, three sub-losses, ragged (non-multiple-of-128) shape:
    # exercises the no-upcast DMA path, the in-kernel tail mask, and the
    # plain-JAX sub-128 remainder.
    shape2 = (2, 3, 17, 9)
    p_bf = jax.random.normal(k3, shape2, dtype=jnp.bfloat16)
    t_bf = jax.random.normal(k4, shape2, dtype=jnp.bfloat16)
    lts = ("mse", "l1", "smooth_l1")
    ws = (0.5, 0.3, 0.2)
    loss2 = multiple_loss(p_bf, t_bf, loss_types=lts, weights=ws)
    jax.block_until_ready(loss2)
    ref2 = multiple_loss_ref(p_bf, t_bf, loss_types=lts, weights=ws)
    assert jnp.allclose(loss2, ref2, rtol=1e-4, atol=1e-5), (loss2, ref2)

    print("KERNEL_OK")
</pallas_src>

<mosaic_0001>
module attributes {stable_mosaic.version = 11 : i64} {
  func.func @_multiple_loss_kernel(%arg0: i32, %arg1: memref<32x128xf32, #tpu.memory_space<vmem>>, %arg2: memref<32x128xf32, #tpu.memory_space<vmem>>, %arg3: memref<1x8x128xf32, #tpu.memory_space<vmem>>) attributes {dimension_semantics = [#tpu.dimension_semantics<parallel>], iteration_bounds = array<i64: 1>, scalar_prefetch = 0 : i64, scratch_operands = 0 : i64, tpu.core_type = #tpu.core_type<tc>, window_params = [{transform_indices = @transform_0, window_bounds = array<i64: 32, 128>}, {transform_indices = @transform_1, window_bounds = array<i64: 32, 128>}, {transform_indices = @transform_2, window_bounds = array<i64: 1, 8, 128>}]} {
    %c0 = arith.constant 0 : index
    %c0_0 = arith.constant 0 : index
    %0 = vector.load %arg1[%c0, %c0_0] : memref<32x128xf32, #tpu.memory_space<vmem>>, vector<32x128xf32>
    %c0_1 = arith.constant 0 : index
    %c0_2 = arith.constant 0 : index
    %1 = vector.load %arg2[%c0_1, %c0_2] : memref<32x128xf32, #tpu.memory_space<vmem>>, vector<32x128xf32>
    %2 = arith.subf %0, %1 : vector<32x128xf32>
    %3 = tpu.iota {dimensions = array<i32: 0>} : vector<32x128xi32>
    %c0_i32 = arith.constant 0 : i32
    %4 = arith.cmpi eq, %arg0, %c0_i32 : i32
    %c16_i32 = arith.constant 16 : i32
    %c32_i32 = arith.constant 32 : i32
    %5 = arith.select %4, %c16_i32, %c32_i32 : i32
    %6 = vector.broadcast %5 : i32 to vector<32x128xi32>
    %7 = arith.cmpi slt, %3, %6 : vector<32x128xi32>
    %cst = arith.constant 0.000000e+00 : f32
    %8 = vector.broadcast %cst : f32 to vector<32x128xf32>
    %9 = arith.select %7, %2, %8 : vector<32x128xi1>, vector<32x128xf32>
    %10 = arith.mulf %9, %9 : vector<32x128xf32>
    %cst_3 = arith.constant dense<0.000000e+00> : vector<128xf32>
    %11 = vector.multi_reduction <add>, %10, %cst_3 [0] : vector<32x128xf32> to vector<128xf32>
    %12 = vector.shape_cast %11 : vector<128xf32> to vector<1x128xf32>
    %13 = math.absf %9 : vector<32x128xf32>
    %cst_4 = arith.constant dense<0.000000e+00> : vector<128xf32>
    %14 = vector.multi_reduction <add>, %13, %cst_4 [0] : vector<32x128xf32> to vector<128xf32>
    %15 = vector.shape_cast %14 : vector<128xf32> to vector<1x128xf32>
    %cst_5 = arith.constant 0.000000e+00 : f32
    %16 = vector.broadcast %cst_5 : f32 to vector<6x128xf32>
    %17 = tpu.concatenate %12, %15, %16 in 0 : vector<1x128xf32>, vector<1x128xf32>, vector<6x128xf32> -> vector<8x128xf32>
    %18 = vector.shape_cast %17 : vector<8x128xf32> to vector<1x8x128xf32>
    %c0_6 = arith.constant 0 : index
    %c0_7 = arith.constant 0 : index
    %c0_8 = arith.constant 0 : index
    %19 = vector.load %arg3[%c0_6, %c0_7, %c0_8] : memref<1x8x128xf32, #tpu.memory_space<vmem>>, vector<1x8x128xf32>
    tpu.vector_store %arg3[%c0_6, %c0_7, %c0_8], %18 {strides = array<i32>} : memref<1x8x128xf32, #tpu.memory_space<vmem>>, vector<1x8x128xf32>,
    return
  }
  func.func @transform_0(%arg0: i32) -> (i32, i32) {
    %c0_i32 = arith.constant 0 : i32
    %c0_i32_0 = arith.constant 0 : i32
    return %arg0, %c0_i32 : i32, i32
  }
  func.func @transform_1(%arg0: i32) -> (i32, i32) {
    %c0_i32 = arith.constant 0 : i32
    %c0_i32_0 = arith.constant 0 : i32
    return %arg0, %c0_i32 : i32, i32
  }
  func.func @transform_2(%arg0: i32) -> (i32, i32, i32) {
    %c0_i32 = arith.constant 0 : i32
    %c0_i32_0 = arith.constant 0 : i32
    %c0_i32_1 = arith.constant 0 : i32
    return %arg0, %c0_i32, %c0_i32_0 : i32, i32, i32
  }
}

</mosaic_0001>

<bundles_post_ra>
// kernel: tpu_custom_call.1
= control target key start
LH: loop header
LB: loop body
LE: loop exit
PB: predicated region body
PF: predicated region fallthrough
CT: control target
= control target key end

     0   :  { %7 = vsyncpa [#allocation3], 0  ;;  %s233_s0 = inlined_call_operand.hbm [shape: f32[16,128], index: 0, kind: input, shape index: {}]   ;;  %s234_s1 = inlined_call_operand.hbm [shape: f32[16,128], index: 1, kind: input, shape index: {}]   ;;  %s235_s2 = inlined_call_operand.hbm [shape: f32[1,8,128], index: 2, kind: output, shape index: {}]  }
   0x1   :  { %8 = vsyncpa [#allocation6], 0 }
   0x2   :  { %9 = vsyncpa [#allocation4], 0 }
   0x3   :  { %13 = vsyncadd [#allocation3], 256  ;;  %s14_s11 = sshll.u32 %s233_s0, 4  ;;  %s204_s12 = smov [#allocation2]   ;;  %s15_s11 = int_to_ptr.hbm [resolvable:$true] %s14_s11 }
   0x4   :  { %s16_s13 = sshll.u32 %s204_s12, 4  ;;  %s205_s14 = smov 128   ;;  %s17_s13 = int_to_ptr.vmem [resolvable:$true] %s16_s13 }
   0x5   :  { %s206_s15 = smov 8  }
   0x6   :  { %22 = dma.hbm_to_vmem [thread:$0]  %s15_s11, 256, %s17_s13, [#allocation3], %s205_s14, %s205_s14, %s206_s15  }
   0x7   :  { %26 = vsyncadd [#allocation6], 256  ;;  %s27_s18 = sshll.u32 %s234_s1, 4  ;;  %s207_s19 = smov [#allocation5]   ;;  %s28_s18 = int_to_ptr.hbm [resolvable:$true] %s27_s18 }
   0x8   :  { %s29_s20 = sshll.u32 %s207_s19, 4  ;;  %s30_s20 = int_to_ptr.vmem [resolvable:$true] %s29_s20 }
   0x9   :  { %35 = dma.hbm_to_vmem [thread:$0]  %s28_s18, 256, %s30_s20, [#allocation6], %s205_s14, %s205_s14, %s206_s15  }
   0xa   :  { %198 = dma.done.wait [#allocation3], 512  }
   0xb   :  { %199 = vsyncadd [#allocation3], 4294966784 }
   0xc   :  { %200 = dma.done.wait [#allocation6], 512  }
   0xd   :  { %201 = vsyncadd [#allocation6], 4294966784  ;;  %v44_v0 = vld [vmem:[#allocation2] sm:$0xff]  ;;  %v45_v1 = vld [vmem:[#allocation2 + $0x8] sm:$0xff]  ;;  %vm98_vm0 = vcmask 1040384   ;;  %s208_s0 = smov [#allocation7]  }
   0xe   :  { %v48_v2 = vld [vmem:[#allocation5] sm:$0xff]  ;;  %v49_v3 = vld [vmem:[#allocation5 + $0x8] sm:$0xff]  ;;  %s108_s1 = sshll.u32 %s208_s0, 4  ;;  %s110_s23 = sshll.u32 %s235_s2, 4  ;;  %vm100_vm1 = vcmask 1041408   ;;  %s109_s1 = int_to_ptr.vmem [resolvable:$true] %s108_s1  ;;  %s111_s23 = int_to_ptr.hbm [resolvable:$true] %s110_s23 }
   0xf   :  { %v52_v4 = vsub.f32 %v44_v0, %v48_v2  ;;  %v53_v5 = vsub.f32 %v45_v1, %v49_v3 }
  0x11   :  { %v72_v6 = vmul.f32 %v52_v4, %v52_v4  ;;  %v85_v7 = vand.u32 2147483647, %v52_v4  ;;  %v73_v8 = vmul.f32 %v53_v5, %v53_v5  ;;  %v86_v9 = vand.u32 2147483647, %v53_v5 }
  0x13   :  { %v76_v10 = vadd.f32 %v73_v8, %v72_v6  ;;  %v89_v11 = vadd.f32 %v86_v9, %v85_v7 }
  0x15   :  { %v79_v12 = vrot.slane %v76_v10, 4  ;;  %v92_v13 = vrot.slane %v89_v11, 4 }
  0x17   :  { %v80_v14 = vadd.f32 %v79_v12, %v76_v10  ;;  %v93_v15 = vadd.f32 %v92_v13, %v89_v11 }
  0x19   :  { %v81_v16 = vrot.slane %v80_v14, 2  ;;  %v94_v17 = vrot.slane %v93_v15, 2 }
  0x1b   :  { %v82_v18 = vadd.f32 %v81_v16, %v80_v14  ;;  %v95_v19 = vadd.f32 %v94_v17, %v93_v15 }
  0x1d   :  { %v83_v20 = vrot.slane %v82_v18, 1  ;;  %v96_v21 = vrot.slane %v95_v19, 1 }
  0x1f   :  { %v84_v22 = vadd.f32 %v83_v20, %v82_v18  ;;  %v97_v23 = vadd.f32 %v96_v21, %v95_v19 }
  0x21   :  { %v99_v24 = vsel %vm98_vm0, %v84_v22, %v97_v23 }
  0x22   :  { %v101_v25 = vsel %vm100_vm1, %v99_v24, 0.0 }
  0x23   :  { %102 = vst [vmem:[#allocation7] sm:$0xff] %v101_v25 }
  0x24   :  { %113 = dma.vmem_to_hbm [thread:$0]  %s109_s1, 128, %s111_s23, [#allocation4]  }
  0x25   :  { %202 = dma.done.wait [#allocation4], 128  }
  0x26   :  { %203 = vsyncadd [#allocation4], 4294967168 }
  0x27   :  { %118 = vsyncpa [#allocation3], 1 }
  0x28   :  { %119 = vsyncpa [#allocation6], 1 }
  0x29   :  { %120 = vsyncpa [#allocation4], 1 }

</bundles_post_ra>
